<compile_context>
chip_gen: v7x
topology: tpu7x:2x2x1
jax: 0.10.0
libtpu: 0.0.40
codegen_flags: <defaults>
</compile_context>

<pallas_src>
import functools

import jax
import jax.numpy as jnp
from jax.experimental import pallas as pl
from jax.experimental.pallas import tpu as pltpu

LANES = 128
MAX_TILE_ROWS = 2048     # 2048 x 128 f32 = 1 MiB per input block
SMALL_N = 65536          # below this, launch overhead dominates -> plain jnp


def _round_up(x, m):
    return ((x + m - 1) // m) * m


# ---------------- elementwise terms (shared by Pallas + jnp fallback) ----------------

def _sq_diff(a, b):
    d = a - b
    return d * d


def _kld_elem(mu, logvar):
    # 1 + logvar - mu^2 - exp(logvar); summed and scaled by -0.5 in the wrapper.
    return 1.0 + logvar - mu * mu - jnp.exp(logvar)


# =====================================================================
# Fused perceptual-MSE kernel: BCE and BCE_inter (4 VGG levels each) in
# a single pallas_call.
# =====================================================================

def _fused_weighted_mse_kernel(bounds_ref, weights_ref, a_ref, b_ref, out_ref,
                               acc_ref, *, tile_rows, num_levels):
    i = pl.program_id(1)                      # row-tile index (reduction axis)

    @pl.when(i == 0)
    def _init():
        acc_ref[...] = jnp.zeros_like(acc_ref)

    a = a_ref[0].astype(jnp.float32)          # (tile_rows, LANES)
    b = b_ref[0].astype(jnp.float32)
    d = a - b
    sq = d * d

    # Per-row 1/denom weight, rebuilt from SMEM level boundaries (scalar
    # prefetch).  Rows past the last level (concat / tile padding) keep weight
    # 0, so padding never contributes.
    gid = i * tile_rows + jax.lax.broadcasted_iota(jnp.int32, sq.shape, 0)
    w = jnp.zeros_like(sq)
    for l in range(num_levels):
        inside = (gid >= bounds_ref[l]) & (gid < bounds_ref[l + 1])
        w = jnp.where(inside, weights_ref[l], w)

    # (8,128) accumulator: the per-step partial sum is pure vreg-wise VPU adds
    # (the reshape stays within native (8,128) tiles, so it is a free view).
    acc_ref[...] += (sq * w).reshape(-1, 8, LANES).sum(axis=0)

    @pl.when(i == pl.num_programs(1) - 1)
    def _finalize():
        # Single cross-lane/sublane reduce, only in the epilogue.
        out_ref[...] = jnp.sum(acc_ref[...]).reshape(1, 1, 1)


def _levels_to_slab(feats, rows_per_level, rows_padded):
    """Flatten 4 feature levels into one lane-dense (rows_padded, 128) slab."""
    parts = []
    for t, r in zip(feats, rows_per_level):
        flat = t.reshape(-1)
        pad = r * LANES - flat.size
        if pad:
            flat = jnp.pad(flat, (0, pad))        # <=127 zeros per level only
        parts.append(flat.reshape(r, LANES))
    tail = rows_padded - sum(rows_per_level)
    if tail:
        parts.append(jnp.zeros((tail, LANES), parts[0].dtype))
    return jnp.concatenate(parts, axis=0)


def fused_perceptual_mse(f_a, f_b, f_c, f_d):
    """Returns (sum_l MSE_sum(f_a[l], f_b[l]) / denom_l,
                sum_l MSE_sum(f_c[l], f_d[l]) / denom_l)   in one Pallas call."""
    num_levels = len(f_a)
    for l in range(num_levels):
        assert f_a[l].shape == f_b[l].shape == f_c[l].shape == f_d[l].shape

    rows_per_level = [pl.cdiv(f_a[l].size, LANES) for l in range(num_levels)]
    denoms = [f_a[l].shape[1] * f_a[l].shape[2] * f_a[l].shape[3]
              for l in range(num_levels)]
    rows_total = sum(rows_per_level)
    tile_rows = min(MAX_TILE_ROWS, _round_up(rows_total, 8))
    rows_padded = _round_up(rows_total, tile_rows)

    # group 0 = (recon vs x), group 1 = (x_inter vs x_inter_truth)
    A = jnp.stack([_levels_to_slab(f_a, rows_per_level, rows_padded),
                   _levels_to_slab(f_c, rows_per_level, rows_padded)])
    B = jnp.stack([_levels_to_slab(f_b, rows_per_level, rows_padded),
                   _levels_to_slab(f_d, rows_per_level, rows_padded)])

    bounds = [0]
    for r in rows_per_level:
        bounds.append(bounds[-1] + r)
    bounds = jnp.asarray(bounds, dtype=jnp.int32)                 # SMEM
    weights = jnp.asarray([1.0 / d for d in denoms], jnp.float32)  # SMEM

    grid = (2, rows_padded // tile_rows)
    kernel = functools.partial(_fused_weighted_mse_kernel,
                               tile_rows=tile_rows, num_levels=num_levels)
    cost = pl.CostEstimate(
        flops=8 * A.size, transcendentals=0,
        bytes_accessed=A.size * A.dtype.itemsize + B.size * B.dtype.itemsize + 8)

    out = pl.pallas_call(
        kernel,
        out_shape=jax.ShapeDtypeStruct((2, 1, 1), jnp.float32),
        grid_spec=pltpu.PrefetchScalarGridSpec(
            num_scalar_prefetch=2,
            grid=grid,
            in_specs=[
                pl.BlockSpec((1, tile_rows, LANES), lambda g, i, bnd, w: (g, i, 0)),
                pl.BlockSpec((1, tile_rows, LANES), lambda g, i, bnd, w: (g, i, 0)),
            ],
            out_specs=pl.BlockSpec((1, 1, 1), lambda g, i, bnd, w: (g, 0, 0)),
            scratch_shapes=[pltpu.VMEM((8, LANES), jnp.float32)],
        ),
        compiler_params=pltpu.CompilerParams(
            # group axis parallel (v7x: one group per TensorCore), rows = reduction
            dimension_semantics=("parallel", "arbitrary"),
        ),
        cost_estimate=cost,
    )(bounds, weights, A, B)
    return out[0, 0, 0], out[1, 0, 0]


# =====================================================================
# Generic streaming pairwise reduction (used only for large tensors;
# small ones fall back to jnp so XLA fuses them).
# =====================================================================

def _streaming_sum_kernel(a_ref, b_ref, out_ref, acc_ref, *,
                          elem_fn, tile_rows, total_rows, ragged):
    i = pl.program_id(0)

    @pl.when(i == 0)
    def _init():
        acc_ref[...] = jnp.zeros_like(acc_ref)

    a = a_ref[...].astype(jnp.float32)
    b = b_ref[...].astype(jnp.float32)
    elem = elem_fn(a, b)

    def _accumulate(v):
        acc_ref[...] += v.reshape(-1, 8, LANES).sum(axis=0)

    if ragged:
        last = pl.num_programs(0) - 1

        @pl.when(i != last)
        def _full():
            _accumulate(elem)

        @pl.when(i == last)
        def _partial():
            # Rows past `total_rows` come from the out-of-range part of the last
            # DMA block and hold undefined data (exp() of it may be inf/NaN).
            # jnp.where is a SELECT, so the garbage never propagates.  Do NOT
            # replace this with multiply-by-mask.
            gid = i * tile_rows + jax.lax.broadcasted_iota(jnp.int32, elem.shape, 0)
            _accumulate(jnp.where(gid < total_rows, elem, 0.0))
    else:
        _accumulate(elem)

    @pl.when(i == pl.num_programs(0) - 1)
    def _finalize():
        out_ref[...] = jnp.sum(acc_ref[...], keepdims=True)


def _pairwise_sum(a, b, elem_fn, *, transcendental=False):
    """sum(elem_fn(a, b)) over all elements."""
    assert a.shape == b.shape, (a.shape, b.shape)
    n = a.size
    a_flat = a.reshape(-1)
    b_flat = b.reshape(-1)

    if n < SMALL_N:
        # Launch overhead would dominate: let XLA fuse a plain reduction.
        return jnp.sum(elem_fn(a_flat.astype(jnp.float32),
                               b_flat.astype(jnp.float32)))

    # Pallas streams the 128-aligned prefix; the <=127-element tail is a tiny
    # fused jnp reduction (no whole-tensor jnp.pad copy).
    main = (n // LANES) * LANES
    rows = main // LANES
    tile_rows = min(MAX_TILE_ROWS, (rows // 8) * 8)
    grid_steps = pl.cdiv(rows, tile_rows)
    ragged = (rows % tile_rows) != 0

    a2 = (a_flat if main == n else a_flat[:main]).reshape(rows, LANES)
    b2 = (b_flat if main == n else b_flat[:main]).reshape(rows, LANES)

    kernel = functools.partial(
        _streaming_sum_kernel, elem_fn=elem_fn,
        tile_rows=tile_rows, total_rows=rows, ragged=ragged)
    cost = pl.CostEstimate(
        flops=(6 if transcendental else 3) * main,
        transcendentals=(main if transcendental else 0),
        bytes_accessed=a2.size * a2.dtype.itemsize + b2.size * b2.dtype.itemsize + 4)

    out = pl.pallas_call(
        kernel,
        out_shape=jax.ShapeDtypeStruct((1, 1), jnp.float32),
        grid_spec=pltpu.PrefetchScalarGridSpec(
            num_scalar_prefetch=0,
            grid=(grid_steps,),
            in_specs=[
                pl.BlockSpec((tile_rows, LANES), lambda i: (i, 0)),
                pl.BlockSpec((tile_rows, LANES), lambda i: (i, 0)),
            ],
            out_specs=pl.BlockSpec((1, 1), lambda i: (0, 0)),
            scratch_shapes=[pltpu.VMEM((8, LANES), jnp.float32)],
        ),
        compiler_params=pltpu.CompilerParams(
            dimension_semantics=("arbitrary",),
        ),
        cost_estimate=cost,
    )(a2, b2)
    total = out[0, 0]

    if main != n:
        total = total + jnp.sum(elem_fn(a_flat[main:].astype(jnp.float32),
                                        b_flat[main:].astype(jnp.float32)))
    return total


def mse_sum(a, b):
    """torch.nn.MSELoss(size_average=False): sum of squared differences."""
    return _pairwise_sum(a, b, _sq_diff)


def kld_sum(mu, logvar):
    """-0.5 * sum(1 + logvar - mu^2 - exp(logvar))."""
    return -0.5 * _pairwise_sum(mu, logvar, _kld_elem, transcendental=True)


# ---------------- Loss.forward ----------------

def loss_forward(recon_x, x, x_inter, x_inter_truth,
                 z_app, z_app2, z_pos,
                 mu_app, mu_pos, logvar_app, logvar_pos,
                 vgg, z_dim, *, bs, alpha, beta, gamma, delta):
    """Forward pass of the PyTorch `Loss` module (z_pos is unused, as in torch)."""
    f_recon, f_x = vgg(recon_x), vgg(x)
    f_i, f_it = vgg(x_inter), vgg(x_inter_truth)

    # Both perceptual terms (4 VGG levels each) in ONE fused Pallas call.
    bce, bce_inter = fused_perceptual_mse(f_recon, f_x, f_i, f_it)

    # APP: MSE between z_app and a detached copy of z_app2.
    z_app_original = jax.lax.stop_gradient(z_app2)
    app = mse_sum(z_app, z_app_original) / z_dim

    kld_pos = kld_sum(mu_pos, logvar_pos)
    kld_app = kld_sum(mu_app, logvar_app)

    loss_dic = [bce / bs, kld_app / bs, kld_pos / bs, app / bs, bce_inter / bs]

    # torch: `if BCE.item() < 170:` include the alpha*BCE_inter term.
    alpha_eff = jnp.where(bce < 170.0, jnp.float32(alpha), jnp.float32(0.0))
    total = (bce + alpha_eff * bce_inter + beta * kld_app
             + gamma * kld_pos + delta * app)
    return total, bce, loss_dic


# ---------------- deterministic VGG stand-in ----------------

def make_vgg_stub(in_channels, key, chans=(8, 16, 32, 32)):
    # TODO(synk): the real torchvision VGG feature extractor is an external
    # pretrained module passed into forward(); it is not part of this loss and
    # is stubbed here with fixed 1x1-conv + relu + 2x2 avg-pool stages that
    # produce 4 feature levels of the expected NCHW layout.
    keys = jax.random.split(key, len(chans))
    ws = []
    c_prev = in_channels
    for c, k in zip(chans, keys):
        ws.append(0.1 * jax.random.normal(k, (c, c_prev), dtype=jnp.float32))
        c_prev = c

    def vgg(img):
        feats = []
        h = img
        for w in ws:
            h = jnp.einsum('oc,nchw->nohw', w, h)
            h = jax.nn.relu(h)
            n, c, H, W = h.shape
            h = h.reshape(n, c, H // 2, 2, W // 2, 2).mean(axis=(3, 5))
            feats.append(h)
        return feats

    return vgg


if __name__ == "__main__":
    key = jax.random.PRNGKey(0)
    keys = jax.random.split(key, 12)

    bs, z_dim = 2, 32
    img_shape = (bs, 3, 16, 16)

    recon_x = jax.nn.sigmoid(jax.random.normal(keys[0], img_shape, jnp.float32))
    x = jax.nn.sigmoid(jax.random.normal(keys[1], img_shape, jnp.float32))
    x_inter = jax.nn.sigmoid(jax.random.normal(keys[2], img_shape, jnp.float32))
    x_inter_truth = jax.nn.sigmoid(jax.random.normal(keys[3], img_shape, jnp.float32))

    z_app = jax.random.normal(keys[4], (bs, z_dim), jnp.float32)
    z_app2 = jax.random.normal(keys[5], (bs, z_dim), jnp.float32)
    z_pos = jax.random.normal(keys[6], (bs, z_dim), jnp.float32)   # unused, as in torch
    mu_app = jax.random.normal(keys[7], (bs, z_dim), jnp.float32)
    mu_pos = jax.random.normal(keys[8], (bs, z_dim), jnp.float32)
    logvar_app = 0.1 * jax.random.normal(keys[9], (bs, z_dim), jnp.float32)
    logvar_pos = 0.1 * jax.random.normal(keys[10], (bs, z_dim), jnp.float32)

    vgg = make_vgg_stub(img_shape[1], keys[11])
    alpha, beta, gamma, delta = 1.0, 1e-3, 1e-3, 1.0

    total, bce, loss_dic = loss_forward(
        recon_x, x, x_inter, x_inter_truth,
        z_app, z_app2, z_pos, mu_app, mu_pos, logvar_app, logvar_pos,
        vgg, z_dim, bs=bs, alpha=alpha, beta=beta, gamma=gamma, delta=delta)
    total = jax.block_until_ready(total)

    # ---- pure-JAX reference (same math, no Pallas) ----
    def ref_mse_sum(a, b):
        d = a.astype(jnp.float32) - b.astype(jnp.float32)
        return jnp.sum(d * d)

    def ref_kld(mu, lv):
        return -0.5 * jnp.sum(1.0 + lv - mu * mu - jnp.exp(lv))

    fr, fx = vgg(recon_x), vgg(x)
    ref_bce = sum(ref_mse_sum(fr[i], fx[i])
                  / (fr[i].shape[1] * fr[i].shape[2] * fr[i].shape[3])
                  for i in range(4))
    fi, ft = vgg(x_inter), vgg(x_inter_truth)
    ref_bce_inter = sum(ref_mse_sum(fi[i], ft[i])
                        / (fi[i].shape[1] * fi[i].shape[2] * fi[i].shape[3])
                        for i in range(4))
    ref_app = ref_mse_sum(z_app, jax.lax.stop_gradient(z_app2)) / z_dim
    ref_kld_pos = ref_kld(mu_pos, logvar_pos)
    ref_kld_app = ref_kld(mu_app, logvar_app)
    ref_alpha = jnp.where(ref_bce < 170.0, alpha, 0.0)
    ref_total = (ref_bce + ref_alpha * ref_bce_inter + beta * ref_kld_app
                 + gamma * ref_kld_pos + delta * ref_app)

    assert jnp.allclose(bce, ref_bce, rtol=1e-4, atol=1e-5), (bce, ref_bce)
    assert jnp.allclose(total, ref_total, rtol=1e-4, atol=1e-5), (total, ref_total)

    # ---- also exercise the generic streaming Pallas path (large + ragged +
    #      non-128-multiple tail) for both elementwise terms ----
    n_big = 3000 * LANES + 37
    xa = jax.random.normal(jax.random.PRNGKey(1), (n_big,), jnp.float32)
    xb = jax.random.normal(jax.random.PRNGKey(2), (n_big,), jnp.float32)
    got_mse = jax.block_until_ready(mse_sum(xa, xb))
    ref_mse = jnp.sum((xa - xb) ** 2)
    assert jnp.allclose(got_mse, ref_mse, rtol=1e-4), (got_mse, ref_mse)

    mu_big = jax.random.normal(jax.random.PRNGKey(3), (n_big,), jnp.float32)
    lv_big = 0.1 * jax.random.normal(jax.random.PRNGKey(4), (n_big,), jnp.float32)
    got_kld = jax.block_until_ready(kld_sum(mu_big, lv_big))
    ref_kld_big = -0.5 * jnp.sum(1.0 + lv_big - mu_big * mu_big - jnp.exp(lv_big))
    assert jnp.allclose(got_kld, ref_kld_big, rtol=1e-3, atol=0.5), (got_kld, ref_kld_big)

    print("KERNEL_OK")
</pallas_src>

<mosaic_0001>
module attributes {stable_mosaic.version = 11 : i64} {
  func.func @_fused_weighted_mse_kernel(%arg0: i32, %arg1: i32, %arg2: memref<5xi32, #tpu.memory_space<smem>>, %arg3: memref<4xf32, #tpu.memory_space<smem>>, %arg4: memref<1x16x128xf32, #tpu.memory_space<vmem>>, %arg5: memref<1x16x128xf32, #tpu.memory_space<vmem>>, %arg6: memref<1x1x1xf32, #tpu.memory_space<vmem>>, %arg7: memref<8x128xf32, #tpu.memory_space<vmem>>) attributes {dimension_semantics = [#tpu.dimension_semantics<parallel>, #tpu.dimension_semantics<arbitrary>], iteration_bounds = array<i64: 2, 1>, scalar_prefetch = 2 : i64, scratch_operands = 1 : i64, tpu.core_type = #tpu.core_type<tc>, window_params = [{transform_indices = @transform_0, window_bounds = array<i64: 1, 16, 128>}, {transform_indices = @transform_1, window_bounds = array<i64: 1, 16, 128>}, {transform_indices = @transform_2, window_bounds = array<i64: 1, 1, 1>}]} {
    %c0_i32 = arith.constant 0 : i32
    %0 = arith.cmpi eq, %arg1, %c0_i32 : i32
    %1 = arith.extui %0 : i1 to i32
    %c0_i32_0 = arith.constant 0 : i32
    %2 = arith.cmpi ne, %1, %c0_i32_0 : i32
    scf.if %2 {
      %cst_21 = arith.constant 0.000000e+00 : f32
      %63 = vector.broadcast %cst_21 : f32 to vector<8x128xf32>
      %c0_22 = arith.constant 0 : index
      %c0_23 = arith.constant 0 : index
      %64 = vector.load %arg7[%c0_22, %c0_23] : memref<8x128xf32, #tpu.memory_space<vmem>>, vector<8x128xf32>
      tpu.vector_store %arg7[%c0_22, %c0_23], %63 {strides = array<i32>} : memref<8x128xf32, #tpu.memory_space<vmem>>, vector<8x128xf32>,
    } else {
    }
    %c0 = arith.constant 0 : index
    %c0_1 = arith.constant 0 : index
    %c0_2 = arith.constant 0 : index
    %3 = vector.load %arg4[%c0, %c0_1, %c0_2] : memref<1x16x128xf32, #tpu.memory_space<vmem>>, vector<1x16x128xf32>
    %4 = vector.shape_cast %3 : vector<1x16x128xf32> to vector<16x128xf32>
    %c0_3 = arith.constant 0 : index
    %c0_4 = arith.constant 0 : index
    %c0_5 = arith.constant 0 : index
    %5 = vector.load %arg5[%c0_3, %c0_4, %c0_5] : memref<1x16x128xf32, #tpu.memory_space<vmem>>, vector<1x16x128xf32>
    %6 = vector.shape_cast %5 : vector<1x16x128xf32> to vector<16x128xf32>
    %7 = arith.subf %4, %6 : vector<16x128xf32>
    %8 = arith.mulf %7, %7 : vector<16x128xf32>
    %c16_i32 = arith.constant 16 : i32
    %9 = arith.muli %arg1, %c16_i32 : i32
    %10 = tpu.iota {dimensions = array<i32: 0>} : vector<16x128xi32>
    %11 = vector.broadcast %9 : i32 to vector<16x128xi32>
    %12 = arith.addi %11, %10 : vector<16x128xi32>
    %cst = arith.constant 0.000000e+00 : f32
    %13 = vector.broadcast %cst : f32 to vector<16x128xf32>
    %c0_6 = arith.constant 0 : index
    %14 = memref.load %arg2[%c0_6] : memref<5xi32, #tpu.memory_space<smem>>
    %15 = vector.broadcast %14 : i32 to vector<16x128xi32>
    %16 = arith.cmpi sge, %12, %15 : vector<16x128xi32>
    %c1 = arith.constant 1 : index
    %17 = memref.load %arg2[%c1] : memref<5xi32, #tpu.memory_space<smem>>
    %18 = vector.broadcast %17 : i32 to vector<16x128xi32>
    %19 = arith.cmpi slt, %12, %18 : vector<16x128xi32>
    %20 = arith.andi %16, %19 : vector<16x128xi1>
    %c0_7 = arith.constant 0 : index
    %21 = memref.load %arg3[%c0_7] : memref<4xf32, #tpu.memory_space<smem>>
    %22 = vector.broadcast %21 : f32 to vector<16x128xf32>
    %23 = arith.select %20, %22, %13 : vector<16x128xi1>, vector<16x128xf32>
    %c1_8 = arith.constant 1 : index
    %24 = memref.load %arg2[%c1_8] : memref<5xi32, #tpu.memory_space<smem>>
    %25 = vector.broadcast %24 : i32 to vector<16x128xi32>
    %26 = arith.cmpi sge, %12, %25 : vector<16x128xi32>
    %c2 = arith.constant 2 : index
    %27 = memref.load %arg2[%c2] : memref<5xi32, #tpu.memory_space<smem>>
    %28 = vector.broadcast %27 : i32 to vector<16x128xi32>
    %29 = arith.cmpi slt, %12, %28 : vector<16x128xi32>
    %30 = arith.andi %26, %29 : vector<16x128xi1>
    %c1_9 = arith.constant 1 : index
    %31 = memref.load %arg3[%c1_9] : memref<4xf32, #tpu.memory_space<smem>>
    %32 = vector.broadcast %31 : f32 to vector<16x128xf32>
    %33 = arith.select %30, %32, %23 : vector<16x128xi1>, vector<16x128xf32>
    %c2_10 = arith.constant 2 : index
    %34 = memref.load %arg2[%c2_10] : memref<5xi32, #tpu.memory_space<smem>>
    %35 = vector.broadcast %34 : i32 to vector<16x128xi32>
    %36 = arith.cmpi sge, %12, %35 : vector<16x128xi32>
    %c3 = arith.constant 3 : index
    %37 = memref.load %arg2[%c3] : memref<5xi32, #tpu.memory_space<smem>>
    %38 = vector.broadcast %37 : i32 to vector<16x128xi32>
    %39 = arith.cmpi slt, %12, %38 : vector<16x128xi32>
    %40 = arith.andi %36, %39 : vector<16x128xi1>
    %c2_11 = arith.constant 2 : index
    %41 = memref.load %arg3[%c2_11] : memref<4xf32, #tpu.memory_space<smem>>
    %42 = vector.broadcast %41 : f32 to vector<16x128xf32>
    %43 = arith.select %40, %42, %33 : vector<16x128xi1>, vector<16x128xf32>
    %c3_12 = arith.constant 3 : index
    %44 = memref.load %arg2[%c3_12] : memref<5xi32, #tpu.memory_space<smem>>
    %45 = vector.broadcast %44 : i32 to vector<16x128xi32>
    %46 = arith.cmpi sge, %12, %45 : vector<16x128xi32>
    %c4 = arith.constant 4 : index
    %47 = memref.load %arg2[%c4] : memref<5xi32, #tpu.memory_space<smem>>
    %48 = vector.broadcast %47 : i32 to vector<16x128xi32>
    %49 = arith.cmpi slt, %12, %48 : vector<16x128xi32>
    %50 = arith.andi %46, %49 : vector<16x128xi1>
    %c3_13 = arith.constant 3 : index
    %51 = memref.load %arg3[%c3_13] : memref<4xf32, #tpu.memory_space<smem>>
    %52 = vector.broadcast %51 : f32 to vector<16x128xf32>
    %53 = arith.select %50, %52, %43 : vector<16x128xi1>, vector<16x128xf32>
    %c0_14 = arith.constant 0 : index
    %c0_15 = arith.constant 0 : index
    %54 = vector.load %arg7[%c0_14, %c0_15] : memref<8x128xf32, #tpu.memory_space<vmem>>, vector<8x128xf32>
    %55 = arith.mulf %8, %53 : vector<16x128xf32>
    %56 = vector.shape_cast %55 : vector<16x128xf32> to vector<2x8x128xf32>
    %cst_16 = arith.constant dense<0.000000e+00> : vector<8x128xf32>
    %57 = vector.multi_reduction <add>, %56, %cst_16 [0] : vector<2x8x128xf32> to vector<8x128xf32>
    %58 = arith.addf %54, %57 : vector<8x128xf32>
    %c0_17 = arith.constant 0 : index
    %c0_18 = arith.constant 0 : index
    %59 = vector.load %arg7[%c0_17, %c0_18] : memref<8x128xf32, #tpu.memory_space<vmem>>, vector<8x128xf32>
    tpu.vector_store %arg7[%c0_17, %c0_18], %58 {strides = array<i32>} : memref<8x128xf32, #tpu.memory_space<vmem>>, vector<8x128xf32>,
    %c0_i32_19 = arith.constant 0 : i32
    %60 = arith.cmpi eq, %arg1, %c0_i32_19 : i32
    %61 = arith.extui %60 : i1 to i32
    %c0_i32_20 = arith.constant 0 : i32
    %62 = arith.cmpi ne, %61, %c0_i32_20 : i32
    scf.if %62 {
      %c0_21 = arith.constant 0 : index
      %c0_22 = arith.constant 0 : index
      %63 = vector.load %arg7[%c0_21, %c0_22] : memref<8x128xf32, #tpu.memory_space<vmem>>, vector<8x128xf32>
      %64 = vector.shape_cast %63 : vector<8x128xf32> to vector<1x8x128xf32>
      %cst_23 = arith.constant dense<0.000000e+00> : vector<1xf32>
      %65 = vector.multi_reduction <add>, %64, %cst_23 [1, 2] : vector<1x8x128xf32> to vector<1xf32>
      %66 = vector.shape_cast %65 : vector<1xf32> to vector<1x1x1xf32>
      %67 = vector.extract %66[0, 0, 0] : f32 from vector<1x1x1xf32>
      %68 = vector.broadcast %67 : f32 to vector<1x1x1xf32>
      %c0_24 = arith.constant 0 : index
      %c0_25 = arith.constant 0 : index
      %c0_26 = arith.constant 0 : index
      %69 = vector.load %arg6[%c0_24, %c0_25, %c0_26] : memref<1x1x1xf32, #tpu.memory_space<vmem>>, vector<1x1x1xf32>
      tpu.vector_store %arg6[%c0_24, %c0_25, %c0_26], %68 {strides = array<i32>} : memref<1x1x1xf32, #tpu.memory_space<vmem>>, vector<1x1x1xf32>,
    } else {
    }
    return
  }
  func.func @transform_0(%arg0: i32, %arg1: i32, %arg2: memref<5xi32, #tpu.memory_space<smem>>, %arg3: memref<4xf32, #tpu.memory_space<smem>>) -> (i32, i32, i32) {
    %c0_i32 = arith.constant 0 : i32
    %c0_i32_0 = arith.constant 0 : i32
    return %arg0, %arg1, %c0_i32 : i32, i32, i32
  }
  func.func @transform_1(%arg0: i32, %arg1: i32, %arg2: memref<5xi32, #tpu.memory_space<smem>>, %arg3: memref<4xf32, #tpu.memory_space<smem>>) -> (i32, i32, i32) {
    %c0_i32 = arith.constant 0 : i32
    %c0_i32_0 = arith.constant 0 : i32
    return %arg0, %arg1, %c0_i32 : i32, i32, i32
  }
  func.func @transform_2(%arg0: i32, %arg1: i32, %arg2: memref<5xi32, #tpu.memory_space<smem>>, %arg3: memref<4xf32, #tpu.memory_space<smem>>) -> (i32, i32, i32) {
    %c0_i32 = arith.constant 0 : i32
    %c0_i32_0 = arith.constant 0 : i32
    %c0_i32_1 = arith.constant 0 : i32
    return %arg0, %c0_i32, %c0_i32_0 : i32, i32, i32
  }
}

</mosaic_0001>

<bundles_post_ra>
// kernel: tpu_custom_call.1
= control target key start
LH: loop header
LB: loop body
LE: loop exit
PB: predicated region body
PF: predicated region fallthrough
CT: control target
= control target key end

     0   :  { %s896_s0 = inlined_call_operand.hbm [shape: s32[5], index: 0, kind: input, shape index: {}]   ;;  %s897_s2 = inlined_call_operand.hbm [shape: f32[2,16,128], index: 2, kind: input, shape index: {}]   ;;  %s898_s3 = inlined_call_operand.hbm [shape: f32[2,16,128], index: 3, kind: input, shape index: {}]   ;;  %s899_s4 = inlined_call_operand.vmem [shape: f32[2,1,1], index: 4, kind: output, shape index: {}]   ;;  %s900_s1 = inlined_call_operand.vmem [shape: f32[4], index: 1, kind: input, shape index: {}]  }
   0x1   :  { %s510_s17 = scalar_lea.hbm %s896_s0, 16 }
   0x2   :  { %p511_p0 = scmp.ne.s32.totalorder %s896_s0, %s510_s17  ;;  %p514_p1 = scmp.lt.u32.totalorder %s510_s17, %s896_s0 }
   0x4   :  { %p516_p2 = pnand %p514_p1, %p511_p0 }
   0x6   :  { %519 = shalt.err (!%p516_p2)  }
   0x7   :  { %s650_s22 = smov [#allocation4]   ;;  %s11_s27 = sshll.u32 %s900_s1, 4  ;;  %s12_s27 = int_to_ptr.vmem [resolvable:$true] %s11_s27 }
   0x8   :  { %10 = dma.hbm_to_smem %s896_s0, 16, %s650_s22, [#allocation3] }
   0x9   :  { %s520_s28 = scalar_lea.vmem %s12_s27, 16  ;;  %p525_p4 = scmp.lt.s32.totalorder %s12_s27, %s12_s27 }
   0xa   :  { %p521_p3 = scmp.ne.s32.totalorder %s12_s27, %s520_s28  ;;  %p526_p5 = scmp.lt.s32.totalorder %s520_s28, %s520_s28 }
   0xc   :  { %p527_p6 = por %p526_p5, %p525_p4 }
   0xe   :  { %p528_p7 = pnand %p527_p6, %p521_p3 }
  0x10   :  { %531 = shalt.err (!%p528_p7)  }
  0x11   :  { %s651_s29 = smov [#allocation5]  }
  0x12   :  { %14 = dma.vmem_to_smem %s12_s27, 16, %s651_s29, [#allocation3] }
  0x13   :  { %616 = dma.done.wait [#allocation3], 32 }
  0x14   :  { %617 = vsyncadd [#allocation3], 4294967264 }
  0x15   :  { %16 = sfence }
  0x16   :  { %17 = vsyncpa [#allocation7], 0 }
  0x17   :  { %19 = vsyncpa [#allocation7 + $0x1], 0 }
  0x18   :  { %20 = vsyncpa [#allocation9], 0 }
  0x19   :  { %22 = vsyncpa [#allocation9 + $0x1], 0  ;;  %s696_s0 = smov 0   ;;  %s698_s1 = smov 0  }
  0x1a   :  { %s700_s30 = smov 0   ;;  %s702_s5 = smov 0  }
  0x1b   :  { %s704_s6 = smov 0   ;;  %s706_s7 = smov 0  }
  0x1c LB: > { %s420_s8 = sadd.s32 4294967295, %s648_s7   ;;  %s40_s9 = sadd.s32 1, %s644_s6  ;;  %s648_s7 = sphi %s706_s7, %s28_s7   ;;  %s644_s6 = sphi %s704_s6, %s911_s6   ;;  %s640_s5 = sphi %s702_s5, %s910_s5   ;;  %s636_s30 = sphi %s700_s30, %s909_s30   ;;  %s632_s1 = sphi %s698_s1, %s908_s1   ;;  %s628_s0 = sphi %s696_s0, %s907_s0  }
  0x1d   : > { %p42_p8 = scmp.ge.s32.totalorder %s40_s9, 2  ;;  %s49_s10 = sadd.s32 1, %s636_s30 }
  0x1e   : > { %p56_p9 = scmp.ne.s32.totalorder %s636_s30, %s632_s1  ;;  %p57_p10 = scmp.eq.s32.totalorder %s648_s7, 0 }
  0x1f   : > { %s913_s9 = smov (%p42_p8, %s40_s9), 0  ;;  %p62_p12 = scmp.ne.s32.totalorder %s632_s1, %s628_s0 }
  0x20   : > { %p732_p11 = por %p57_p10, %p56_p9  ;;  %s44_s12 = ssub.s32 %s644_s6, %s913_s9 }
  0x21   : > { %p63_p13 = scmp.eq.s32.totalorder %s420_s8, 0  ;;  %p47_p0 = scmp.eq.s32.totalorder %s44_s12, 0 }
  0x22   : > { %p457_p2 = scmp.lt.s32.totalorder %s648_s7, 2  ;;  %s748_s15 = sand.u32 1, %s636_s30  }
  0x23   : > { %p739_p1 = por %p63_p13, %p62_p12  ;;  %s442_s16 = sshll.u32 %s644_s6, 8 }
  0x24   : > { %s745_s14 = scalar_select %p47_p0, %s636_s30, %s49_s10  }
  0x25   : > { %s903_s13 = scalar_select %p739_p1, 1, 0 }
  0x26   : > { %s424_s17 = sshll.u32 %s748_s15, 4  ;;  %s757_s20 = scalar_lea.hbm %s897_s2, %s442_s16 }
  0x27   : > { %s144_s21 = scalar_lea.vmem [#allocation6], %s424_s17  ;;  %p763_p3 = pnand %p457_p2, %p732_p11 }
  0x28   : > { %s153_s22 = sshll.u32 %s144_s21, 4  ;;  %s141_s24 = scalar_lea.sflag [#allocation7], %s748_s15  ;;  %s767_s22 = int_to_ptr.vmem [resolvable:$true] %s153_s22 }
  0x29   : > { %s532_s25 = scalar_lea.hbm %s757_s20, 256  ;;  %p534_p5 = pneg %p763_p3 }
  0x2a   : > { %p533_p4 = scmp.ne.s32.totalorder %s757_s20, %s532_s25  ;;  %s537_s28 = scalar_lea.hbm %s897_s2, 512 }
  0x2b   : > { %p538_p8 = scmp.lt.u32.totalorder %s757_s20, %s897_s2  ;;  %p539_p9 = scmp.lt.u32.totalorder %s537_s28, %s532_s25 }
  0x2c   : > { %p535_p6 = pnand %p534_p5, %p533_p4  ;;  %p541_p11 = scmp.lt.u32.totalorder %s532_s25, %s757_s20 }
  0x2d   : > { %p540_p10 = por %p539_p9, %p538_p8 }
  0x2e   : > { %p536_p7 = pneg %p535_p6 }
  0x2f   : > { %p542_p12 = por %p541_p11, %p540_p10 }
  0x31   : > { %p543_p13 = pnand %p542_p12, %p536_p7 }
  0x33   : > { %546 = shalt.err (!%p543_p13)
}
  0x34   : > { %s547_s8 = scalar_lea.vmem %s767_s22, 256  ;;  %s652_s10 = smov [#allocation6]  }
  0x35   : > { %p548_p0 = scmp.ne.s32.totalorder %s767_s22, %s547_s8  ;;  %s552_s11 = sshll.u32 %s652_s10, 4  ;;  %s553_s11 = int_to_ptr.vmem [resolvable:$false] %s552_s11 }
  0x36   : > { %s554_s12 = scalar_lea.vmem %s553_s11, 512  ;;  %p555_p6 = scmp.lt.s32.totalorder %s767_s22, %s553_s11 }
  0x37   : > { %p550_p2 = pnand %p548_p0, %p534_p5  ;;  %p556_p8 = scmp.lt.s32.totalorder %s554_s12, %s547_s8 }
  0x39   : > { %p551_p4 = pneg %p550_p2  ;;  %p557_p9 = por %p556_p8, %p555_p6 }
  0x3b   : > { %p558_p10 = pnand %p557_p9, %p551_p4 }
  0x3d   : > { %561 = shalt.err (!%p558_p10)
}
  0x3e   : > { %s653_s18 = smov 128   ;;  %s654_s19 = smov 8  }
  0x3f   : > { %453 = dma.hbm_to_vmem [thread:$0]  (!%p763_p3), %s757_s20, 256, %s767_s22, %s141_s24, %s653_s18, %s653_s18, %s654_s19  }
  0x40   : > { %p430_p7 = scmp.ge.s32.totalorder %s648_s7, 1  ;;  %p184_p11 = scmp.lt.s32.totalorder %s648_s7, 3 }
  0x41   : > { %s811_s27 = scalar_lea.hbm %s898_s3, %s442_s16  ;;  %s167_s28 = scalar_lea.vmem [#allocation8], %s424_s17 }
  0x42   : > { %p802_p12 = pnand %p430_p7, %p184_p11  ;;  %s176_s29 = sshll.u32 %s167_s28, 4  ;;  %s815_s29 = int_to_ptr.vmem [resolvable:$true] %s176_s29 }
  0x43   : > { %s164_s20 = scalar_lea.sflag [#allocation9], %s748_s15  ;;  %s562_s22 = scalar_lea.hbm %s811_s27, 256 }
  0x44   : > { %p563_p13 = scmp.ne.s32.totalorder %s811_s27, %s562_s22  ;;  %s567_s16 = scalar_lea.hbm %s898_s3, 512 }
  0x45   : > { %p568_p4 = scmp.lt.u32.totalorder %s811_s27, %s898_s3  ;;  %p569_p6 = scmp.lt.u32.totalorder %s567_s16, %s562_s22 }
  0x46   : > { %p565_p0 = pnand %p563_p13, %p534_p5  ;;  %p571_p9 = scmp.lt.u32.totalorder %s562_s22, %s811_s27 }
  0x47   : > { %p570_p8 = por %p569_p6, %p568_p4 }
  0x48   : > { %p566_p2 = pneg %p565_p0 }
  0x49   : > { %p572_p10 = por %p571_p9, %p570_p8 }
  0x4b   : > { %p573_p7 = pnand %p572_p10, %p566_p2 }
  0x4d   : > { %576 = shalt.err (!%p573_p7)
}
  0x4e   : > { %s577_s17 = scalar_lea.vmem %s815_s29, 256  ;;  %s655_s11 = smov [#allocation8]  }
  0x4f   : > { %p578_p11 = scmp.ne.s32.totalorder %s815_s29, %s577_s17  ;;  %s582_s12 = sshll.u32 %s655_s11, 4  ;;  %s583_s12 = int_to_ptr.vmem [resolvable:$false] %s582_s12 }
  0x50   : > { %s584_s25 = scalar_lea.vmem %s583_s12, 512  ;;  %p585_p1 = scmp.lt.s32.totalorder %s815_s29, %s583_s12 }
  0x51   : > { %p580_p13 = pnand %p578_p11, %p534_p5  ;;  %p586_p4 = scmp.lt.s32.totalorder %s584_s25, %s577_s17 }
  0x53   : > { %p581_p0 = pneg %p580_p13  ;;  %p587_p6 = por %p586_p4, %p585_p1 }
  0x55   : > { %p588_p8 = pnand %p587_p6, %p581_p0 }
  0x57   : > { %591 = shalt.err (!%p588_p8)
}
  0x58   : > { %456 = dma.hbm_to_vmem [thread:$0]  (!%p763_p3), %s811_s27, 256, %s815_s29, %s164_s20, %s653_s18, %s653_s18, %s654_s19  }
  0x59   : > { %188 = sbr.rel (%p802_p12) target bundleno = 326 (0x146), region = 28  ;;  %s190_s26 = sand.u32 (!%p802_p12), 1, %s632_s1  }
  0x5a   : > { %s431_s28 = sshll.u32 (!%p802_p12), %s190_s26, 4  ;;  %s191_s22 = scalar_lea.sflag (!%p802_p12), [#allocation7], %s190_s26 }
  0x5b   : > { %s194_s24 = scalar_lea.vmem (!%p802_p12), [#allocation6], %s431_s28  ;;  %p906_p1 = scmp.ne.s32.totalorder (!%p802_p12), %s903_s13, 0 }
  0x60   : > { %619 = dma.done.wait (%p906_p1), %s191_s22, 256  }
  0x61   : > { %621 = vsyncadd (%p906_p1), %s191_s22, 4294967040  ;;  %s200_s23 = scalar_lea.sflag [#allocation9], %s190_s26  ;;  %s203_s15 = scalar_lea.vmem [#allocation8], %s431_s28 }
  0x62   : > { %623 = dma.done.wait (%p906_p1), %s200_s23, 256  }
  0x63   : > { %625 = vsyncadd (%p906_p1), %s200_s23, 4294967040  ;;  %v246_v0 = vlaneseq  ;;  %s252_s18 = sld [smem:[#allocation4]]  ;;  %s433_s19 = sld [smem:[#allocation4 + $0x1]]  ;;  %v237_v3 = vld [vmem:[%s194_s24] sm:$0xff]  ;;  %v238_v4 = vld [vmem:[%s194_s24 + $0x8] sm:$0xff] }
  0x64   : > { %s262_s21 = sld [smem:[#allocation5]]  ;;  %s434_s27 = sld [smem:[#allocation4 + $0x2]]  ;;  %v239_v5 = vld [vmem:[%s203_s15] sm:$0xff]  ;;  %v240_v7 = vld [vmem:[%s203_s15 + $0x8] sm:$0xff] }
  0x65   : > { %v247_v1 = vshrl.u32 %v246_v0, 7  ;;  %s857_s29 = sld [smem:[#allocation5 + $0x1]]  ;;  %s859_s20 = sld [smem:[#allocation4 + $0x3]]  ;;  %v241_v8 = vsub.f32 %v237_v3, %v239_v5  ;;  %v242_v11 = vsub.f32 %v238_v4, %v240_v7 }
  0x66   : > { %s861_s0 = sld [smem:[#allocation5 + $0x2]]  ;;  %s863_s16 = sld [smem:[#allocation4 + $0x4]] }
  0x67   : > { %v248_v2 = vadd.s32 8, %v247_v1  ;;  %s865_s13 = sld [smem:[#allocation5 + $0x3]]  ;;  %v243_v13 = vmul.f32 %v241_v8, %v241_v8  ;;  %v244_v23 = vmul.f32 %v242_v11, %v242_v11  ;;  %p229_p3 = scmp.lt.s32.totalorder %s640_s5, 1 }
  0x69   : > { %v253_v6 = vstv %s252_s18  ;;  %v257_v9 = vstv %s433_s19  ;;  %s915_s5 = smov (!%p229_p3, %s640_s5), 1 }
  0x6a   : > { %vm254_vm0 = vcmp.ge.s32.totalorder %v247_v1, %v253_v6  ;;  %vm255_vm1 = vcmp.ge.s32.totalorder %v248_v2, %v253_v6  ;;  %vm258_vm2 = vcmp.lt.s32.totalorder %v247_v1, %v257_v9  ;;  %vm259_vm3 = vcmp.lt.s32.totalorder %v248_v2, %v257_v9  ;;  %s231_s17 = scalar_lea.vmem %s899_s4, %s915_s5 }
  0x6b   : > { %v263_v10 = vstv %s262_s21  ;;  %vm260_vm4 = vmand %vm254_vm0, %vm258_vm2  ;;  %vm266_vm5 = vcmp.ge.s32.totalorder %v247_v1, %v257_v9  ;;  %vm267_vm6 = vcmp.ge.s32.totalorder %v248_v2, %v257_v9  ;;  %v269_v12 = vstv %s434_s27 }
  0x6c   : > { %vm261_vm7 = vmand %vm255_vm1, %vm259_vm3  ;;  %v264_v14 = vsel %vm260_vm4, %v263_v10, 0.0  ;;  %vm270_vm8 = vcmp.lt.s32.totalorder %v247_v1, %v269_v12  ;;  %vm271_vm9 = vcmp.lt.s32.totalorder %v248_v2, %v269_v12  ;;  %v275_v16 = vstv %s857_s29 }
  0x6d   : > { %v265_v15 = vsel %vm261_vm7, %v263_v10, 0.0  ;;  %vm272_vm10 = vmand %vm266_vm5, %vm270_vm8  ;;  %vm278_vm11 = vcmp.ge.s32.totalorder %v247_v1, %v269_v12  ;;  %vm279_vm12 = vcmp.ge.s32.totalorder %v248_v2, %v269_v12  ;;  %v281_v18 = vstv %s859_s20 }
  0x6e   : > { %vm273_vm13 = vmand %vm267_vm6, %vm271_vm9  ;;  %v276_v17 = vsel %vm272_vm10, %v275_v16, %v264_v14  ;;  %v287_v19 = vstv %s861_s0  ;;  %v293_v20 = vstv %s863_s16  ;;  %vm282_vm14 = vcmp.lt.s32.totalorder %v247_v1, %v281_v18 }
  0x6f   : > { %v277_v21 = vsel %vm273_vm13, %v275_v16, %v265_v15  ;;  %vm283_vm15 = vcmp.lt.s32.totalorder %v248_v2, %v281_v18  ;;  %vm290_vm0 = vcmp.ge.s32.totalorder %v247_v1, %v281_v18  ;;  %vm284_vm2 = vmand %vm278_vm11, %vm282_vm14  ;;  %vm291_vm1 = vcmp.ge.s32.totalorder %v248_v2, %v281_v18 }
  0x70   : > { %vm294_vm3 = vcmp.lt.s32.totalorder %v247_v1, %v293_v20  ;;  %vm295_vm4 = vcmp.lt.s32.totalorder %v248_v2, %v293_v20  ;;  %v299_v22 = vstv %s865_s13  ;;  %vm285_vm5 = vmand %vm279_vm12, %vm283_vm15  ;;  %v288_v24 = vsel %vm284_vm2, %v287_v19, %v276_v17 }
  0x71   : > { %v289_v25 = vsel %vm285_vm5, %v287_v19, %v277_v21  ;;  %vm296_vm7 = vmand %vm290_vm0, %vm294_vm3  ;;  %vm322_vm8 = vcmask 0  }
  0x72   : > { %vm297_vm6 = vmand %vm291_vm1, %vm295_vm4  ;;  %v300_v26 = vsel %vm296_vm7, %v299_v22, %v288_v24 }
  0x73   : > { %v301_v27 = vsel %vm297_vm6, %v299_v22, %v289_v25  ;;  %v303_v28 = vmul.f32 %v300_v26, %v243_v13 }
  0x74   : > { %v304_v29 = vmul.f32 %v301_v27, %v244_v23 }
  0x76   : > { %v305_v30 = vadd.f32 %v304_v29, %v303_v28 }
  0x78   : > { %312 = vadd.xlane.f32.xlu0 %v305_v30 }
 0x105   : > { %v313_v31 = vpop.xlane.xlu0 %312 }
 0x106   : > { %v314_v32 = vrot.slane %v313_v31, 4 }
 0x108   : > { %v315_v33 = vadd.f32 %v314_v32, %v313_v31 }
 0x10a   : > { %v316_v34 = vrot.slane %v315_v33, 2 }
 0x10c   : > { %v317_v35 = vadd.f32 %v316_v34, %v315_v33 }
 0x10e   : > { %v318_v36 = vrot.slane %v317_v35, 1 }
 0x110   : > { %v319_v37 = vadd.f32 %v318_v36, %v317_v35 }
 0x112   : > { %444 = vpush %v319_v37 }
 0x143   : > { %s445_s11 = spop %444 }
 0x144   : > { %v321_v38 = vstv %s445_s11 }
 0x145   : > { %323 = vst.msk [vmem:[%s231_s17] sm:$0x1] %vm322_vm8, %v321_v38 }
 0x146 PF: > { %s28_s7 = sadd.s32 1, %s648_s7   ;;  %s907_s0 = smov %s632_s1 }
 0x147   : > { %p25_p5 = scmp.ge.s32.totalorder %s28_s7, 4   ;;  %s908_s1 = smov %s636_s30 }
 0x148   : > { %s909_s30 = smov %s745_s14  ;;  %s910_s5 = smov %s644_s6 }
 0x149   : > { %s911_s6 = smov %s913_s9  ;;  %27 = sbr.rel (!%p25_p5) target bundleno = 28 (0x1c), region = 89 }
 0x150   :  { %341 = vsyncpa [#allocation7], 1 }
 0x151   :  { %343 = vsyncpa [#allocation7 + $0x1], 1 }
 0x152   :  { %344 = vsyncpa [#allocation9], 1 }
 0x153   :  { %346 = vsyncpa [#allocation9 + $0x1], 1 }

</bundles_post_ra>
